<compile_context>
chip_gen: v7x
topology: tpu7x:2x2x1
jax: 0.10.0
libtpu: 0.0.40
codegen_flags: <defaults>
</compile_context>

<pallas_src>
import math
import functools

import jax
import jax.numpy as jnp
from jax.experimental import pallas as pl
from jax.experimental.pallas import tpu as pltpu


def _round_up(x, m):
    return ((x + m - 1) // m) * m


def _gaussian_block_kernel(x_ref, w_ref, b_ref, mu_ref, lv_ref, *, n_zp):
    """acc = x @ [W_mu | W_lv] + [b_mu | b_lv]; split halves; clamp log_var."""
    x = x_ref[...]
    w = w_ref[...]
    if x.dtype != w.dtype:
        x = x.astype(w.dtype)  # in-kernel low-precision cast (bf16 path)
    acc = jnp.dot(x, w, preferred_element_type=jnp.float32) + b_ref[...]
    # Columns [0, n_zp) = mu (lane-padded head), [n_zp, 2*n_zp) = log_var.
    mu_ref[...] = acc[:, :n_zp].astype(mu_ref.dtype)
    lv_ref[...] = jnp.clip(acc[:, n_zp:], -20.0, 3.0).astype(lv_ref.dtype)


def prepare_gaussian_block_params(w_mu, b_mu, w_lv, b_lv, *,
                                  compute_dtype=jnp.float32):
    """Fuse the two heads into one padded weight/bias. Call ONCE at init time
    (outside the per-step jit) so no concat/pad/cast HBM passes happen per call.

    Returns (w_cat, b_cat, n_z):
      w_cat: (n_x, 2*n_zp) with mu head in [:n_zp], log_var head in [n_zp:],
             each zero-padded to n_zp = round_up(n_z, 128) lanes, compute_dtype.
      b_cat: (1, 2*n_zp) float32 fused bias.
    """
    n_x, n_z = w_mu.shape
    n_zp = _round_up(n_z, 128)
    wpad = ((0, 0), (0, n_zp - n_z))
    w_cat = jnp.concatenate([jnp.pad(w_mu, wpad), jnp.pad(w_lv, wpad)], axis=1)
    b_cat = jnp.concatenate([jnp.pad(b_mu, (0, n_zp - n_z)),
                             jnp.pad(b_lv, (0, n_zp - n_z))]).reshape(1, 2 * n_zp)
    return w_cat.astype(compute_dtype), b_cat.astype(jnp.float32), n_z


def gaussian_block_fused(x, w_cat, b_cat, n_z, *, out_dtype=jnp.float32,
                         max_tb=512, min_grid_steps=1):
    """Fused forward: x (B, n_x), pre-fused params -> (mu, log_var), each (B, n_z).

    min_grid_steps: set to 2 on v7x (2 TCs/chip) so both cores get work under
    the "parallel" batch axis; leave at 1 on v5e/v6e to avoid per-step overhead.
    """
    B, n_x = x.shape
    n_out = w_cat.shape[1]
    n_zp = n_out // 2
    assert n_zp % 128 == 0 and n_zp >= n_z

    # Batch tiling: cdiv-based so padding waste is < one sublane-group per tile.
    sublane = 16 if w_cat.dtype == jnp.bfloat16 else 8
    num_tiles = max(pl.cdiv(B, max_tb), min_grid_steps)
    tb = _round_up(pl.cdiv(B, num_tiles), sublane)
    b_pad = num_tiles * tb
    x_p = jnp.pad(x, ((0, b_pad - B), (0, 0))) if b_pad != B else x

    kernel = functools.partial(_gaussian_block_kernel, n_zp=n_zp)
    in_isz = jnp.dtype(x.dtype).itemsize
    w_isz = jnp.dtype(w_cat.dtype).itemsize
    out_isz = jnp.dtype(out_dtype).itemsize

    cost = pl.CostEstimate(
        flops=2 * b_pad * n_x * n_out,
        transcendentals=0,
        bytes_accessed=(b_pad * n_x * in_isz          # x
                        + n_x * n_out * w_isz         # fused weights
                        + n_out * 4                   # fused bias
                        + 2 * b_pad * n_zp * out_isz))  # mu + log_var

    def build(weight_buffers):
        if weight_buffers == 1:
            # Constant index_map -> never re-fetched -> one VMEM buffer suffices.
            w_spec = pl.BlockSpec((n_x, n_out), lambda i: (0, 0),
                                  pipeline_mode=pl.Buffered(1))
            b_spec = pl.BlockSpec((1, n_out), lambda i: (0, 0),
                                  pipeline_mode=pl.Buffered(1))
        else:
            w_spec = pl.BlockSpec((n_x, n_out), lambda i: (0, 0))
            b_spec = pl.BlockSpec((1, n_out), lambda i: (0, 0))

        # VMEM budget from the actual buffers (+25% headroom).
        vmem_bytes = (weight_buffers * (n_x * n_out * w_isz + n_out * 4)
                      + 2 * tb * n_x * in_isz          # x tile, double-buffered
                      + 2 * 2 * tb * n_zp * out_isz)   # 2 outputs, double-buffered
        vmem_limit = min(max(int(vmem_bytes * 1.25), 16 * 1024 * 1024),
                         128 * 1024 * 1024)

        return pl.pallas_call(
            kernel,
            out_shape=(jax.ShapeDtypeStruct((b_pad, n_zp), out_dtype),
                       jax.ShapeDtypeStruct((b_pad, n_zp), out_dtype)),
            grid_spec=pltpu.PrefetchScalarGridSpec(
                num_scalar_prefetch=0,
                grid=(num_tiles,),
                in_specs=[
                    pl.BlockSpec((tb, n_x), lambda i: (i, 0)),  # x tile (pipelined)
                    w_spec,                                     # weights (resident)
                    b_spec,                                     # bias (resident)
                ],
                out_specs=(pl.BlockSpec((tb, n_zp), lambda i: (i, 0)),
                           pl.BlockSpec((tb, n_zp), lambda i: (i, 0))),
            ),
            compiler_params=pltpu.CompilerParams(
                dimension_semantics=("parallel",),
                vmem_limit_bytes=vmem_limit),
            cost_estimate=cost,
        )

    try:
        mu_p, lv_p = build(1)(x_p, w_cat, b_cat)
    except Exception:
        # pipeline_mode not supported on this jax version: fall back to the
        # default double-buffered resident-weight spec (correctness unchanged).
        mu_p, lv_p = build(2)(x_p, w_cat, b_cat)

    if b_pad != B or n_zp != n_z:
        return mu_p[:B, :n_z], lv_p[:B, :n_z]
    return mu_p, lv_p


def gaussian_block(x, w_mu, b_mu, w_lv, b_lv, *, compute_dtype=jnp.float32,
                   out_dtype=jnp.float32):
    """One-shot API matching the PyTorch module. NOTE: this re-fuses the weights
    on every call; for repeated forwards hoist prepare_gaussian_block_params()."""
    w_cat, b_cat, n_z = prepare_gaussian_block_params(
        w_mu, b_mu, w_lv, b_lv, compute_dtype=compute_dtype)
    return gaussian_block_fused(x, w_cat, b_cat, n_z, out_dtype=out_dtype)


def init_params(key, n_x, n_z):
    """Match FullyConnected.reset_parameters: uniform(-stdv, stdv), stdv=1/sqrt(n_z)."""
    stdv = 1.0 / math.sqrt(n_z)
    k1, k2, k3, k4 = jax.random.split(key, 4)
    w_mu = jax.random.uniform(k1, (n_x, n_z), jnp.float32, -stdv, stdv)
    b_mu = jax.random.uniform(k2, (n_z,), jnp.float32, -stdv, stdv)
    w_lv = jax.random.uniform(k3, (n_x, n_z), jnp.float32, -stdv, stdv)
    b_lv = jax.random.uniform(k4, (n_z,), jnp.float32, -stdv, stdv)
    return w_mu, b_mu, w_lv, b_lv


if __name__ == "__main__":
    key = jax.random.PRNGKey(0)
    kx, kp = jax.random.split(key)

    B, n_x, n_z = 8, 32, 16
    x = jax.random.normal(kx, (B, n_x), jnp.float32)
    w_mu, b_mu, w_lv, b_lv = init_params(kp, n_x, n_z)

    # Plain-JAX reference.
    mu_ref = x @ w_mu + b_mu
    lv_ref = jnp.clip(x @ w_lv + b_lv, -20.0, 3.0)

    # f32 path: fuse/pad the weights ONCE, then run the fused kernel.
    w_cat, b_cat, nz = prepare_gaussian_block_params(w_mu, b_mu, w_lv, b_lv)
    mu, log_var = gaussian_block_fused(x, w_cat, b_cat, nz)
    jax.block_until_ready((mu, log_var))
    assert mu.shape == (B, n_z) and log_var.shape == (B, n_z)
    assert jnp.allclose(mu, mu_ref, atol=1e-5), "mu mismatch (f32)"
    assert jnp.allclose(log_var, lv_ref, atol=1e-5), "log_var mismatch (f32)"

    # Second forward reusing the same prepared params (no per-call weight pass).
    mu2, lv2 = gaussian_block_fused(x, w_cat, b_cat, nz)
    jax.block_until_ready((mu2, lv2))
    assert jnp.allclose(mu2, mu_ref, atol=1e-5)

    # bf16 weights + in-kernel x cast (f32 MXU accumulation): looser tolerance.
    w_cat_bf, b_cat_bf, nz_bf = prepare_gaussian_block_params(
        w_mu, b_mu, w_lv, b_lv, compute_dtype=jnp.bfloat16)
    mu_bf, lv_bf = gaussian_block_fused(x, w_cat_bf, b_cat_bf, nz_bf)
    jax.block_until_ready((mu_bf, lv_bf))
    assert jnp.allclose(mu_bf, mu_ref, atol=5e-2), "mu mismatch (bf16)"
    assert jnp.allclose(lv_bf, lv_ref, atol=5e-2), "log_var mismatch (bf16)"

    print("KERNEL_OK")
</pallas_src>

<mosaic_0001>
module attributes {stable_mosaic.version = 11 : i64} {
  func.func @_gaussian_block_kernel(%arg0: i32, %arg1: memref<8x32xf32, #tpu.memory_space<vmem>>, %arg2: memref<32x256xf32, #tpu.memory_space<vmem>>, %arg3: memref<1x256xf32, #tpu.memory_space<vmem>>, %arg4: memref<8x128xf32, #tpu.memory_space<vmem>>, %arg5: memref<8x128xf32, #tpu.memory_space<vmem>>) attributes {dimension_semantics = [#tpu.dimension_semantics<parallel>], iteration_bounds = array<i64: 1>, scalar_prefetch = 0 : i64, scratch_operands = 0 : i64, tpu.core_type = #tpu.core_type<tc>, window_params = [{transform_indices = @transform_0, window_bounds = array<i64: 8, 32>}, {pipeline_mode = #tpu.pipeline_mode<synchronous>, transform_indices = @transform_1, window_bounds = array<i64: 32, 256>}, {pipeline_mode = #tpu.pipeline_mode<synchronous>, transform_indices = @transform_2, window_bounds = array<i64: 1, 256>}, {transform_indices = @transform_3, window_bounds = array<i64: 8, 128>}, {transform_indices = @transform_4, window_bounds = array<i64: 8, 128>}]} {
    %c0 = arith.constant 0 : index
    %c0_0 = arith.constant 0 : index
    %0 = vector.load %arg1[%c0, %c0_0] : memref<8x32xf32, #tpu.memory_space<vmem>>, vector<8x32xf32>
    %c0_1 = arith.constant 0 : index
    %c0_2 = arith.constant 0 : index
    %1 = vector.load %arg2[%c0_1, %c0_2] : memref<32x256xf32, #tpu.memory_space<vmem>>, vector<32x256xf32>
    %cst = arith.constant dense<0.000000e+00> : vector<8x256xf32>
    %2 = tpu.matmul %0, %1, %cst {dimension_numbers = #tpu.dot_dimension_numbers<[1], [0], [0], [1], [0, 0, 1, 1], [], []>} : vector<8x32xf32>, vector<32x256xf32>, vector<8x256xf32> -> vector<8x256xf32>
    %c0_3 = arith.constant 0 : index
    %c0_4 = arith.constant 0 : index
    %3 = vector.load %arg3[%c0_3, %c0_4] : memref<1x256xf32, #tpu.memory_space<vmem>>, vector<1x256xf32>
    %4 = vector.broadcast %3 : vector<1x256xf32> to vector<8x256xf32>
    %5 = arith.addf %2, %4 : vector<8x256xf32>
    %6 = vector.extract_strided_slice %5 {offsets = [0, 0], sizes = [8, 128], strides = [1, 1]} : vector<8x256xf32> to vector<8x128xf32>
    %c0_5 = arith.constant 0 : index
    %c0_6 = arith.constant 0 : index
    %7 = vector.load %arg4[%c0_5, %c0_6] : memref<8x128xf32, #tpu.memory_space<vmem>>, vector<8x128xf32>
    tpu.vector_store %arg4[%c0_5, %c0_6], %6 {strides = array<i32>} : memref<8x128xf32, #tpu.memory_space<vmem>>, vector<8x128xf32>,
    %8 = vector.extract_strided_slice %5 {offsets = [0, 128], sizes = [8, 128], strides = [1, 1]} : vector<8x256xf32> to vector<8x128xf32>
    %cst_7 = arith.constant -2.000000e+01 : f32
    %cst_8 = arith.constant 3.000000e+00 : f32
    %9 = vector.broadcast %cst_7 : f32 to vector<8x128xf32>
    %10 = arith.maximumf %9, %8 : vector<8x128xf32>
    %11 = vector.broadcast %cst_8 : f32 to vector<8x128xf32>
    %12 = arith.minimumf %11, %10 : vector<8x128xf32>
    %c0_9 = arith.constant 0 : index
    %c0_10 = arith.constant 0 : index
    %13 = vector.load %arg5[%c0_9, %c0_10] : memref<8x128xf32, #tpu.memory_space<vmem>>, vector<8x128xf32>
    tpu.vector_store %arg5[%c0_9, %c0_10], %12 {strides = array<i32>} : memref<8x128xf32, #tpu.memory_space<vmem>>, vector<8x128xf32>,
    return
  }
  func.func @transform_0(%arg0: i32) -> (i32, i32) {
    %c0_i32 = arith.constant 0 : i32
    %c0_i32_0 = arith.constant 0 : i32
    return %arg0, %c0_i32 : i32, i32
  }
  func.func @transform_1(%arg0: i32) -> (i32, i32) {
    %c0_i32 = arith.constant 0 : i32
    %c0_i32_0 = arith.constant 0 : i32
    %c0_i32_1 = arith.constant 0 : i32
    return %c0_i32, %c0_i32_0 : i32, i32
  }
  func.func @transform_2(%arg0: i32) -> (i32, i32) {
    %c0_i32 = arith.constant 0 : i32
    %c0_i32_0 = arith.constant 0 : i32
    %c0_i32_1 = arith.constant 0 : i32
    return %c0_i32, %c0_i32_0 : i32, i32
  }
  func.func @transform_3(%arg0: i32) -> (i32, i32) {
    %c0_i32 = arith.constant 0 : i32
    %c0_i32_0 = arith.constant 0 : i32
    return %arg0, %c0_i32 : i32, i32
  }
  func.func @transform_4(%arg0: i32) -> (i32, i32) {
    %c0_i32 = arith.constant 0 : i32
    %c0_i32_0 = arith.constant 0 : i32
    return %arg0, %c0_i32 : i32, i32
  }
}

module attributes {stable_mosaic.version = 11 : i64} {
  func.func @_gaussian_block_kernel(%arg0: i32, %arg1: memref<8x32xf32, #tpu.memory_space<vmem>>, %arg2: memref<32x256xf32, #tpu.memory_space<vmem>>, %arg3: memref<1x256xf32, #tpu.memory_space<vmem>>, %arg4: memref<8x128xf32, #tpu.memory_space<vmem>>, %arg5: memref<8x128xf32, #tpu.memory_space<vmem>>) attributes {dimension_semantics = [#tpu.dimension_semantics<parallel>], iteration_bounds = array<i64: 1>, scalar_prefetch = 0 : i64, scratch_operands = 0 : i64, tpu.core_type = #tpu.core_type<tc>, window_params = [{transform_indices = @transform_0, window_bounds = array<i64: 8, 32>}, {pipeline_mode = #tpu.pipeline_mode<synchronous>, transform_indices = @transform_1, window_bounds = array<i64: 32, 256>}, {pipeline_mode = #tpu.pipeline_mode<synchronous>, transform_indices = @transform_2, window_bounds = array<i64: 1, 256>}, {transform_indices = @transform_3, window_bounds = array<i64: 8, 128>}, {transform_indices = @transform_4, window_bounds = array<i64: 8, 128>}]} {
    %c0 = arith.constant 0 : index
    %c0_0 = arith.constant 0 : index
    %0 = vector.load %arg1[%c0, %c0_0] : memref<8x32xf32, #tpu.memory_space<vmem>>, vector<8x32xf32>
    %c0_1 = arith.constant 0 : index
    %c0_2 = arith.constant 0 : index
    %1 = vector.load %arg2[%c0_1, %c0_2] : memref<32x256xf32, #tpu.memory_space<vmem>>, vector<32x256xf32>
    %cst = arith.constant dense<0.000000e+00> : vector<8x256xf32>
    %2 = tpu.matmul %0, %1, %cst {dimension_numbers = #tpu.dot_dimension_numbers<[1], [0], [0], [1], [0, 0, 1, 1], [], []>} : vector<8x32xf32>, vector<32x256xf32>, vector<8x256xf32> -> vector<8x256xf32>
    %c0_3 = arith.constant 0 : index
    %c0_4 = arith.constant 0 : index
    %3 = vector.load %arg3[%c0_3, %c0_4] : memref<1x256xf32, #tpu.memory_space<vmem>>, vector<1x256xf32>
    %4 = vector.broadcast %3 : vector<1x256xf32> to vector<8x256xf32>
    %5 = arith.addf %2, %4 : vector<8x256xf32>
    %6 = vector.extract_strided_slice %5 {offsets = [0, 0], sizes = [8, 128], strides = [1, 1]} : vector<8x256xf32> to vector<8x128xf32>
    %c0_5 = arith.constant 0 : index
    %c0_6 = arith.constant 0 : index
    %7 = vector.load %arg4[%c0_5, %c0_6] : memref<8x128xf32, #tpu.memory_space<vmem>>, vector<8x128xf32>
    tpu.vector_store %arg4[%c0_5, %c0_6], %6 {strides = array<i32>} : memref<8x128xf32, #tpu.memory_space<vmem>>, vector<8x128xf32>,
    %8 = vector.extract_strided_slice %5 {offsets = [0, 128], sizes = [8, 128], strides = [1, 1]} : vector<8x256xf32> to vector<8x128xf32>
    %cst_7 = arith.constant -2.000000e+01 : f32
    %cst_8 = arith.constant 3.000000e+00 : f32
    %9 = vector.broadcast %cst_7 : f32 to vector<8x128xf32>
    %10 = arith.maximumf %9, %8 : vector<8x128xf32>
    %11 = vector.broadcast %cst_8 : f32 to vector<8x128xf32>
    %12 = arith.minimumf %11, %10 : vector<8x128xf32>
    %c0_9 = arith.constant 0 : index
    %c0_10 = arith.constant 0 : index
    %13 = vector.load %arg5[%c0_9, %c0_10] : memref<8x128xf32, #tpu.memory_space<vmem>>, vector<8x128xf32>
    tpu.vector_store %arg5[%c0_9, %c0_10], %12 {strides = array<i32>} : memref<8x128xf32, #tpu.memory_space<vmem>>, vector<8x128xf32>,
    return
  }
  func.func @transform_0(%arg0: i32) -> (i32, i32) {
    %c0_i32 = arith.constant 0 : i32
    %c0_i32_0 = arith.constant 0 : i32
    return %arg0, %c0_i32 : i32, i32
  }
  func.func @transform_1(%arg0: i32) -> (i32, i32) {
    %c0_i32 = arith.constant 0 : i32
    %c0_i32_0 = arith.constant 0 : i32
    %c0_i32_1 = arith.constant 0 : i32
    return %c0_i32, %c0_i32_0 : i32, i32
  }
  func.func @transform_2(%arg0: i32) -> (i32, i32) {
    %c0_i32 = arith.constant 0 : i32
    %c0_i32_0 = arith.constant 0 : i32
    %c0_i32_1 = arith.constant 0 : i32
    return %c0_i32, %c0_i32_0 : i32, i32
  }
  func.func @transform_3(%arg0: i32) -> (i32, i32) {
    %c0_i32 = arith.constant 0 : i32
    %c0_i32_0 = arith.constant 0 : i32
    return %arg0, %c0_i32 : i32, i32
  }
  func.func @transform_4(%arg0: i32) -> (i32, i32) {
    %c0_i32 = arith.constant 0 : i32
    %c0_i32_0 = arith.constant 0 : i32
    return %arg0, %c0_i32 : i32, i32
  }
}

</mosaic_0001>

<bundles_post_ra>
// kernel: tpu_custom_call.1
= control target key start
LH: loop header
LB: loop body
LE: loop exit
PB: predicated region body
PF: predicated region fallthrough
CT: control target
= control target key end

     0   :  { %10 = vsyncpa [#allocation3], 0  ;;  %s376_s0 = inlined_call_operand.hbm [shape: f32[8,32], index: 0, kind: input, shape index: {}]   ;;  %s377_s1 = inlined_call_operand.hbm [shape: f32[32,256], index: 1, kind: input, shape index: {}]   ;;  %s378_s2 = inlined_call_operand.vmem [shape: f32[1,256], index: 2, kind: input, shape index: {}]   ;;  %s379_s3 = inlined_call_operand.hbm [shape: f32[8,128], index: 3, kind: output, shape index: {0}]   ;;  %s380_s4 = inlined_call_operand.hbm [shape: f32[8,128], index: 4, kind: output, shape index: {1}]  }
   0x1   :  { %11 = vsyncpa [#allocation6], 0 }
   0x2   :  { %12 = vsyncpa [#allocation4], 0 }
   0x3   :  { %13 = vsyncpa [#allocation9], 0  ;;  %s286_s15 = smov [#allocation2]   ;;  %s287_s17 = smov [#allocation5]  }
   0x4   :  { %s20_s16 = sshll.u32 %s286_s15, 4  ;;  %s29_s18 = sshll.u32 %s287_s17, 4  ;;  %s21_s16 = int_to_ptr.vmem [resolvable:$true] %s20_s16  ;;  %s318_s18 = int_to_ptr.vmem [resolvable:$true] %s29_s18 }
   0x5   :  { %s190_s21 = scalar_lea.hbm %s376_s0, 128 }
   0x6   :  { %p191_p0 = scmp.ne.s32.totalorder %s376_s0, %s190_s21  ;;  %p194_p1 = scmp.lt.u32.totalorder %s190_s21, %s376_s0 }
   0x8   :  { %p196_p2 = pnand %p194_p1, %p191_p0 }
   0xa   :  { %199 = shalt.err (!%p196_p2)
}
   0xb   :  { %s200_s26 = scalar_lea.vmem %s21_s16, 128  ;;  %p205_p4 = scmp.lt.s32.totalorder %s21_s16, %s21_s16 }
   0xc   :  { %p201_p3 = scmp.ne.s32.totalorder %s21_s16, %s200_s26  ;;  %p206_p5 = scmp.lt.s32.totalorder %s200_s26, %s200_s26 }
   0xe   :  { %p207_p6 = por %p206_p5, %p205_p4 }
  0x10   :  { %p208_p7 = pnand %p207_p6, %p201_p3 }
  0x12   :  { %211 = shalt.err (!%p208_p7)
}
  0x13   :  { %23 = dma.hbm_to_vmem [thread:$0]  %s376_s0, 128, %s21_s16, [#allocation3]  }
  0x14   :  { %s212_s5 = scalar_lea.hbm %s377_s1, 1024 }
  0x15   :  { %p213_p8 = scmp.ne.s32.totalorder %s377_s1, %s212_s5  ;;  %p216_p9 = scmp.lt.u32.totalorder %s212_s5, %s377_s1 }
  0x17   :  { %p218_p10 = pnand %p216_p9, %p213_p8 }
  0x19   :  { %221 = shalt.err (!%p218_p10)
}
  0x1a   :  { %s222_s10 = scalar_lea.vmem %s318_s18, 1024  ;;  %p227_p12 = scmp.lt.s32.totalorder %s318_s18, %s318_s18 }
  0x1b   :  { %p223_p11 = scmp.ne.s32.totalorder %s318_s18, %s222_s10  ;;  %p228_p13 = scmp.lt.s32.totalorder %s222_s10, %s222_s10 }
  0x1d   :  { %p229_p0 = por %p228_p13, %p227_p12 }
  0x1f   :  { %p230_p1 = pnand %p229_p0, %p223_p11 }
  0x21   :  { %233 = shalt.err (!%p230_p1)
}
  0x22   :  { %s288_s0 = smov 256   ;;  %s289_s11 = smov 16  }
  0x23   :  { %35 = dma.hbm_to_vmem [thread:$0]  %s377_s1, 1024, %s318_s18, [#allocation6], %s288_s0, %s288_s0, %s289_s11  }
  0x24   :  { %278 = dma.done.wait [#allocation3], 128  }
  0x25   :  { %279 = vsyncadd [#allocation3], 4294967168 }
  0x26   :  { %280 = dma.done.wait [#allocation6], 1024  }
  0x27   :  { %281 = vsyncadd [#allocation6], 4294966272  ;;  %v290_v0 = vmov 0.0   ;;  %v46_v1 = vld [vmem:[#allocation5 + $0x8] sm:$0xff]  ;;  %v48_v2 = vld [vmem:[#allocation5 + $0x18] sm:$0xff]  ;;  %vm65_vm0 = vcmask 261120   ;;  %v55_v14 = vlaneseq }
  0x28   :  { %133 = vmatprep.mubr.f32.mxu0 %v290_v0  ;;  %v45_v3 = vld [vmem:[#allocation5] sm:$0xff]  ;;  %v175_v4 = vpack.c.bf16 %v48_v2, %v46_v1  ;;  %v47_v5 = vld [vmem:[#allocation5 + $0x10] sm:$0xff]  ;;  %v50_v6 = vld [vmem:[#allocation5 + $0x28] sm:$0xff]  ;;  %s291_s15 = smov [#allocation7]   ;;  %s292_s17 = smov [#allocation8]  }
  0x29   :  { %v52_v7 = vld [vmem:[#allocation5 + $0x38] sm:$0xff]  ;;  %v177_v8 = vpack.c.bf16 %v47_v5, %v45_v3  ;;  %v49_v10 = vld [vmem:[#allocation5 + $0x20] sm:$0xff]  ;;  %v51_v11 = vld [vmem:[#allocation5 + $0x30] sm:$0xff]  ;;  %v56_v15 = vshrl.u32 %v55_v14, 7  ;;  %s150_s16 = sshll.u32 %s291_s15, 4  ;;  %s160_s18 = sshll.u32 %s292_s17, 4  ;;  %s151_s16 = int_to_ptr.vmem [resolvable:$true] %s150_s16  ;;  %s161_s18 = int_to_ptr.vmem [resolvable:$true] %s160_s18 }
  0x2a   :  { %v179_v9 = vpack.c.bf16 %v52_v7, %v50_v6  ;;  %176 = vmatprep.subr.bf16.mxu0 %v175_v4  ;;  %v181_v12 = vpack.c.bf16 %v51_v11, %v49_v10  ;;  %v44_v13 = vld [vmem:[#allocation2] sm:$0xff]  ;;  %s234_s19 = scalar_lea.vmem %s151_s16, 128  ;;  %p239_p3 = scmp.lt.s32.totalorder %s151_s16, %s151_s16 }
  0x2b   :  { %178 = vmatpush1.bf16.msra.mxu0 %v177_v8  ;;  %v57_v16 = vsub.s32 0, %v56_v15  ;;  %v53_v17 = vld [vmem:[%s378_s2] sm:$0x3]  ;;  %v61_v18 = vsub.s32 1, %v56_v15  ;;  %p235_p2 = scmp.ne.s32.totalorder %s151_s16, %s234_s19  ;;  %p240_p4 = scmp.lt.s32.totalorder %s234_s19, %s234_s19 }
  0x2c   :  { %180 = vmatprep.subr.bf16.mxu0 %v179_v9 }
  0x2d   :  { %v58_v19 = vrot.slane %v53_v17, %v57_v16  ;;  %v62_v20 = vrot.slane %v53_v17, %v61_v18  ;;  %p241_p5 = por %p240_p4, %p239_p3 }
  0x2f   :  { %182 = vmatpush1.bf16.msra.mxu0 %v181_v12  ;;  %p242_p6 = pnand %p241_p5, %p235_p2 }
  0x32   :  { %174 = vmatmul.mubr.msk.f32.vlgmr.msra.gmra.mrb[0].mxu0 %vm65_vm0, %v44_v13 }
 0x105   :  { %v135_v21 = vpop.f32.mrb[0].mxu0 }
 0x106   :  { %v136_v22 = vadd.f32 %v135_v21, %v58_v19  ;;  %v137_v23 = vpop.f32.mrb[1].mxu0 }
 0x107   :  { %v138_v24 = vadd.f32 %v137_v23, %v62_v20 }
 0x108   :  { %140 = vst [vmem:[#allocation7] sm:$0xff] %v136_v22 }
 0x109   :  { %v141_v25 = vmax.f32 %v138_v24, -20.0 }
 0x10a   :  { %245 = shalt.err (!%p242_p6)
}
 0x10b   :  { %s246_s21 = scalar_lea.hbm %s379_s3, 128 }
 0x10c   :  { %p247_p7 = scmp.ne.s32.totalorder %s379_s3, %s246_s21  ;;  %p250_p8 = scmp.lt.u32.totalorder %s246_s21, %s379_s3 }
 0x10e   :  { %p252_p9 = pnand %p250_p8, %p247_p7 }
 0x110   :  { %255 = shalt.err (!%p252_p9)
}
 0x111   :  { %153 = dma.vmem_to_hbm [thread:$0]  %s151_s16, 128, %s379_s3, [#allocation4]   ;;  %v142_v26 = vmin.f32 %v141_v25, 3.0 }
 0x112   :  { %s256_s28 = scalar_lea.vmem %s161_s18, 128  ;;  %p261_p11 = scmp.lt.s32.totalorder %s161_s18, %s161_s18 }
 0x113   :  { %143 = vst [vmem:[#allocation8] sm:$0xff] %v142_v26  ;;  %p257_p10 = scmp.ne.s32.totalorder %s161_s18, %s256_s28  ;;  %p262_p12 = scmp.lt.s32.totalorder %s256_s28, %s256_s28 }
 0x115   :  { %p263_p13 = por %p262_p12, %p261_p11 }
 0x117   :  { %p264_p0 = pnand %p263_p13, %p257_p10 }
 0x119   :  { %267 = shalt.err (!%p264_p0)
}
 0x11a   :  { %s268_s5 = scalar_lea.hbm %s380_s4, 128 }
 0x11b   :  { %p269_p1 = scmp.ne.s32.totalorder %s380_s4, %s268_s5  ;;  %p272_p2 = scmp.lt.u32.totalorder %s268_s5, %s380_s4 }
 0x11d   :  { %p274_p3 = pnand %p272_p2, %p269_p1 }
 0x11f   :  { %277 = shalt.err (!%p274_p3)
}
 0x120   :  { %163 = dma.vmem_to_hbm [thread:$0]  %s161_s18, 128, %s380_s4, [#allocation9]  }
 0x121   :  { %282 = dma.done.wait [#allocation4], 128  }
 0x122   :  { %283 = vsyncadd [#allocation4], 4294967168 }
 0x123   :  { %284 = dma.done.wait [#allocation9], 128  }
 0x124   :  { %285 = vsyncadd [#allocation9], 4294967168 }
 0x125   :  { %170 = vsyncpa [#allocation3], 1 }
 0x126   :  { %171 = vsyncpa [#allocation6], 1 }
 0x127   :  { %172 = vsyncpa [#allocation4], 1 }
 0x128   :  { %173 = vsyncpa [#allocation9], 1 }

// kernel: tpu_custom_call.1
= control target key start
LH: loop header
LB: loop body
LE: loop exit
PB: predicated region body
PF: predicated region fallthrough
CT: control target
= control target key end

     0   :  { %10 = vsyncpa [#allocation3], 0  ;;  %s376_s0 = inlined_call_operand.hbm [shape: f32[8,32], index: 0, kind: input, shape index: {}]   ;;  %s377_s1 = inlined_call_operand.hbm [shape: f32[32,256], index: 1, kind: input, shape index: {}]   ;;  %s378_s2 = inlined_call_operand.vmem [shape: f32[1,256], index: 2, kind: input, shape index: {}]   ;;  %s379_s3 = inlined_call_operand.hbm [shape: f32[8,128], index: 3, kind: output, shape index: {0}]   ;;  %s380_s4 = inlined_call_operand.hbm [shape: f32[8,128], index: 4, kind: output, shape index: {1}]  }
   0x1   :  { %11 = vsyncpa [#allocation6], 0 }
   0x2   :  { %12 = vsyncpa [#allocation4], 0 }
   0x3   :  { %13 = vsyncpa [#allocation9], 0  ;;  %s286_s15 = smov [#allocation2]   ;;  %s287_s17 = smov [#allocation5]  }
   0x4   :  { %s20_s16 = sshll.u32 %s286_s15, 4  ;;  %s29_s18 = sshll.u32 %s287_s17, 4  ;;  %s21_s16 = int_to_ptr.vmem [resolvable:$true] %s20_s16  ;;  %s318_s18 = int_to_ptr.vmem [resolvable:$true] %s29_s18 }
   0x5   :  { %s190_s21 = scalar_lea.hbm %s376_s0, 128 }
   0x6   :  { %p191_p0 = scmp.ne.s32.totalorder %s376_s0, %s190_s21  ;;  %p194_p1 = scmp.lt.u32.totalorder %s190_s21, %s376_s0 }
   0x8   :  { %p196_p2 = pnand %p194_p1, %p191_p0 }
   0xa   :  { %199 = shalt.err (!%p196_p2)
}
   0xb   :  { %s200_s26 = scalar_lea.vmem %s21_s16, 128  ;;  %p205_p4 = scmp.lt.s32.totalorder %s21_s16, %s21_s16 }
   0xc   :  { %p201_p3 = scmp.ne.s32.totalorder %s21_s16, %s200_s26  ;;  %p206_p5 = scmp.lt.s32.totalorder %s200_s26, %s200_s26 }
   0xe   :  { %p207_p6 = por %p206_p5, %p205_p4 }
  0x10   :  { %p208_p7 = pnand %p207_p6, %p201_p3 }
  0x12   :  { %211 = shalt.err (!%p208_p7)
}
  0x13   :  { %23 = dma.hbm_to_vmem [thread:$0]  %s376_s0, 128, %s21_s16, [#allocation3]  }
  0x14   :  { %s212_s5 = scalar_lea.hbm %s377_s1, 1024 }
  0x15   :  { %p213_p8 = scmp.ne.s32.totalorder %s377_s1, %s212_s5  ;;  %p216_p9 = scmp.lt.u32.totalorder %s212_s5, %s377_s1 }
  0x17   :  { %p218_p10 = pnand %p216_p9, %p213_p8 }
  0x19   :  { %221 = shalt.err (!%p218_p10)
}
  0x1a   :  { %s222_s10 = scalar_lea.vmem %s318_s18, 1024  ;;  %p227_p12 = scmp.lt.s32.totalorder %s318_s18, %s318_s18 }
  0x1b   :  { %p223_p11 = scmp.ne.s32.totalorder %s318_s18, %s222_s10  ;;  %p228_p13 = scmp.lt.s32.totalorder %s222_s10, %s222_s10 }
  0x1d   :  { %p229_p0 = por %p228_p13, %p227_p12 }
  0x1f   :  { %p230_p1 = pnand %p229_p0, %p223_p11 }
  0x21   :  { %233 = shalt.err (!%p230_p1)
}
  0x22   :  { %s288_s0 = smov 256   ;;  %s289_s11 = smov 16  }
  0x23   :  { %35 = dma.hbm_to_vmem [thread:$0]  %s377_s1, 1024, %s318_s18, [#allocation6], %s288_s0, %s288_s0, %s289_s11  }
  0x24   :  { %278 = dma.done.wait [#allocation3], 128  }
  0x25   :  { %279 = vsyncadd [#allocation3], 4294967168 }
  0x26   :  { %280 = dma.done.wait [#allocation6], 1024  }
  0x27   :  { %281 = vsyncadd [#allocation6], 4294966272  ;;  %v290_v0 = vmov 0.0   ;;  %v46_v1 = vld [vmem:[#allocation5 + $0x8] sm:$0xff]  ;;  %v48_v2 = vld [vmem:[#allocation5 + $0x18] sm:$0xff]  ;;  %vm65_vm0 = vcmask 261120   ;;  %v55_v14 = vlaneseq }
  0x28   :  { %133 = vmatprep.mubr.f32.mxu0 %v290_v0  ;;  %v45_v3 = vld [vmem:[#allocation5] sm:$0xff]  ;;  %v175_v4 = vpack.c.bf16 %v48_v2, %v46_v1  ;;  %v47_v5 = vld [vmem:[#allocation5 + $0x10] sm:$0xff]  ;;  %v50_v6 = vld [vmem:[#allocation5 + $0x28] sm:$0xff]  ;;  %s291_s15 = smov [#allocation7]   ;;  %s292_s17 = smov [#allocation8]  }
  0x29   :  { %v52_v7 = vld [vmem:[#allocation5 + $0x38] sm:$0xff]  ;;  %v177_v8 = vpack.c.bf16 %v47_v5, %v45_v3  ;;  %v49_v10 = vld [vmem:[#allocation5 + $0x20] sm:$0xff]  ;;  %v51_v11 = vld [vmem:[#allocation5 + $0x30] sm:$0xff]  ;;  %v56_v15 = vshrl.u32 %v55_v14, 7  ;;  %s150_s16 = sshll.u32 %s291_s15, 4  ;;  %s160_s18 = sshll.u32 %s292_s17, 4  ;;  %s151_s16 = int_to_ptr.vmem [resolvable:$true] %s150_s16  ;;  %s161_s18 = int_to_ptr.vmem [resolvable:$true] %s160_s18 }
  0x2a   :  { %v179_v9 = vpack.c.bf16 %v52_v7, %v50_v6  ;;  %176 = vmatprep.subr.bf16.mxu0 %v175_v4  ;;  %v181_v12 = vpack.c.bf16 %v51_v11, %v49_v10  ;;  %v44_v13 = vld [vmem:[#allocation2] sm:$0xff]  ;;  %s234_s19 = scalar_lea.vmem %s151_s16, 128  ;;  %p239_p3 = scmp.lt.s32.totalorder %s151_s16, %s151_s16 }
  0x2b   :  { %178 = vmatpush1.bf16.msra.mxu0 %v177_v8  ;;  %v57_v16 = vsub.s32 0, %v56_v15  ;;  %v53_v17 = vld [vmem:[%s378_s2] sm:$0x3]  ;;  %v61_v18 = vsub.s32 1, %v56_v15  ;;  %p235_p2 = scmp.ne.s32.totalorder %s151_s16, %s234_s19  ;;  %p240_p4 = scmp.lt.s32.totalorder %s234_s19, %s234_s19 }
  0x2c   :  { %180 = vmatprep.subr.bf16.mxu0 %v179_v9 }
  0x2d   :  { %v58_v19 = vrot.slane %v53_v17, %v57_v16  ;;  %v62_v20 = vrot.slane %v53_v17, %v61_v18  ;;  %p241_p5 = por %p240_p4, %p239_p3 }
  0x2f   :  { %182 = vmatpush1.bf16.msra.mxu0 %v181_v12  ;;  %p242_p6 = pnand %p241_p5, %p235_p2 }
  0x32   :  { %174 = vmatmul.mubr.msk.f32.vlgmr.msra.gmra.mrb[0].mxu0 %vm65_vm0, %v44_v13 }
 0x105   :  { %v135_v21 = vpop.f32.mrb[0].mxu0 }
 0x106   :  { %v136_v22 = vadd.f32 %v135_v21, %v58_v19  ;;  %v137_v23 = vpop.f32.mrb[1].mxu0 }
 0x107   :  { %v138_v24 = vadd.f32 %v137_v23, %v62_v20 }
 0x108   :  { %140 = vst [vmem:[#allocation7] sm:$0xff] %v136_v22 }
 0x109   :  { %v141_v25 = vmax.f32 %v138_v24, -20.0 }
 0x10a   :  { %245 = shalt.err (!%p242_p6)
}
 0x10b   :  { %s246_s21 = scalar_lea.hbm %s379_s3, 128 }
 0x10c   :  { %p247_p7 = scmp.ne.s32.totalorder %s379_s3, %s246_s21  ;;  %p250_p8 = scmp.lt.u32.totalorder %s246_s21, %s379_s3 }
 0x10e   :  { %p252_p9 = pnand %p250_p8, %p247_p7 }
 0x110   :  { %255 = shalt.err (!%p252_p9)
}
 0x111   :  { %153 = dma.vmem_to_hbm [thread:$0]  %s151_s16, 128, %s379_s3, [#allocation4]   ;;  %v142_v26 = vmin.f32 %v141_v25, 3.0 }
 0x112   :  { %s256_s28 = scalar_lea.vmem %s161_s18, 128  ;;  %p261_p11 = scmp.lt.s32.totalorder %s161_s18, %s161_s18 }
 0x113   :  { %143 = vst [vmem:[#allocation8] sm:$0xff] %v142_v26  ;;  %p257_p10 = scmp.ne.s32.totalorder %s161_s18, %s256_s28  ;;  %p262_p12 = scmp.lt.s32.totalorder %s256_s28, %s256_s28 }
 0x115   :  { %p263_p13 = por %p262_p12, %p261_p11 }
 0x117   :  { %p264_p0 = pnand %p263_p13, %p257_p10 }
 0x119   :  { %267 = shalt.err (!%p264_p0)
}
 0x11a   :  { %s268_s5 = scalar_lea.hbm %s380_s4, 128 }
 0x11b   :  { %p269_p1 = scmp.ne.s32.totalorder %s380_s4, %s268_s5  ;;  %p272_p2 = scmp.lt.u32.totalorder %s268_s5, %s380_s4 }
 0x11d   :  { %p274_p3 = pnand %p272_p2, %p269_p1 }
 0x11f   :  { %277 = shalt.err (!%p274_p3)
}
 0x120   :  { %163 = dma.vmem_to_hbm [thread:$0]  %s161_s18, 128, %s380_s4, [#allocation9]  }
 0x121   :  { %282 = dma.done.wait [#allocation4], 128  }
 0x122   :  { %283 = vsyncadd [#allocation4], 4294967168 }
 0x123   :  { %284 = dma.done.wait [#allocation9], 128  }
 0x124   :  { %285 = vsyncadd [#allocation9], 4294967168 }
 0x125   :  { %170 = vsyncpa [#allocation3], 1 }
 0x126   :  { %171 = vsyncpa [#allocation6], 1 }
 0x127   :  { %172 = vsyncpa [#allocation4], 1 }
 0x128   :  { %173 = vsyncpa [#allocation9], 1 }

</bundles_post_ra>
